<compile_context>
chip_gen: v6e
topology: v6e:2x2x1
jax: 0.10.0
libtpu: 0.0.40
codegen_flags: <defaults>
</compile_context>

<pallas_src>
import jax
import jax.numpy as jnp
from jax.experimental import pallas as pl
from jax.experimental.pallas import tpu as pltpu


def _round_up(a, m):
    return (a + m - 1) // m * m


def multiclass_value_forward(x, thresholds, mapping, *, lanes=128, tb=1024):
    """Pallas kernel: count thresholds exceeded, then remap labels per column.

    x:          (T, B) float32
    thresholds: (C-1,) float32   (the `classes` parameter, any order)
    mapping:    (C, B) int32     combined randomize/reverse label map per column
    returns:    (T, B) int32
    """
    T, B = x.shape
    C, Bm = mapping.shape
    Cm1 = thresholds.shape[0]
    assert Bm == B and Cm1 == C - 1 and C >= 2
    assert lanes % 128 == 0
    # TODO(synk): only B <= lanes with lanes % B == 0 is supported here; a general
    # batch width needs a padded-column layout in the wrapper.
    assert lanes % B == 0

    # ---- wrapper-side (plain JAX) preprocessing: sorted thresholds + delta LUT ----
    thr_sorted = jnp.sort(thresholds.astype(jnp.float32))          # (C-1,)
    mapping = mapping.astype(jnp.int32)
    base = mapping[0:1, :]                                         # (1, B)
    delta = mapping[1:, :] - mapping[:-1, :]                       # (C-1, B)

    reps = lanes // B                                              # lane-repeat factor
    thr_lanes = jnp.broadcast_to(thr_sorted[:, None], (Cm1, lanes))
    delta_lanes = jnp.tile(delta, (1, reps))                       # (C-1, lanes)
    base_lanes = jnp.tile(base, (1, reps))                         # (1, lanes)

    # ---- lane-dense flattening + row tiling ----
    total = T * B
    rows = pl.cdiv(total, lanes)
    tb_cap = max(8, (tb // 8) * 8)                 # sublane-aligned tile cap
    tb = min(tb_cap, _round_up(rows, 8))           # don't over-pad tiny inputs
    rows_pad = _round_up(rows, tb)

    x_flat = x.reshape(-1).astype(jnp.float32)
    pad = rows_pad * lanes - total
    if pad:
        x_flat = jnp.pad(x_flat, (0, pad))
    x_flat = x_flat.reshape(rows_pad, lanes)

    def kernel(thr_ref, delta_ref, base_ref, x_ref, o_ref):
        xv = x_ref[...]                                    # (tb, lanes) f32
        thr = thr_ref[...]                                 # (C-1, lanes) f32 (sorted)
        dlt = delta_ref[...]                               # (C-1, lanes) i32
        acc = jnp.broadcast_to(base_ref[...], xv.shape).astype(jnp.int32)
        # Unrolled over the small static number of thresholds; since thresholds are
        # sorted, the exceeded set is a prefix, so the deltas telescope to mapping[d].
        for k in range(Cm1):
            acc = acc + jnp.where(xv > thr[k:k + 1, :], dlt[k:k + 1, :], 0)
        o_ref[...] = acc

    out_flat = pl.pallas_call(
        kernel,
        out_shape=jax.ShapeDtypeStruct((rows_pad, lanes), jnp.int32),
        grid=(rows_pad // tb,),
        in_specs=[
            pl.BlockSpec((Cm1, lanes), lambda i: (0, 0)),   # sorted thresholds (resident)
            pl.BlockSpec((Cm1, lanes), lambda i: (0, 0)),   # delta LUT (resident)
            pl.BlockSpec((1, lanes), lambda i: (0, 0)),     # base labels (resident)
            pl.BlockSpec((tb, lanes), lambda i: (i, 0)),    # x tile
        ],
        out_specs=pl.BlockSpec((tb, lanes), lambda i: (i, 0)),
        compiler_params=pltpu.CompilerParams(
            dimension_semantics=("parallel",)),             # megacore sharding on v7x
    )(thr_lanes, delta_lanes, base_lanes, x_flat)

    return out_flat.reshape(-1)[:total].reshape(T, B)


def build_column_mapping(key, num_classes, batch, ordered_p=0.5):
    """Glue: emulate randomize_classes + reversal as a per-column label LUT."""
    # TODO(synk): randomize_classes in the original module may draw a fresh randperm
    # per call; a single shared permutation is used here for the randomized columns.
    k_rand, k_perm, k_rev = jax.random.split(key, 3)
    randomized = jax.random.uniform(k_rand, (batch,)) > ordered_p         # bool (B,)
    perm = jax.random.permutation(k_perm, num_classes)                    # shared randperm
    reverse = jax.random.uniform(k_rev, (batch,)) > 0.5                   # bool (B,)
    ident = jnp.arange(num_classes)
    base = jnp.where(randomized[:, None], perm[None, :], ident[None, :])  # (B, C)
    mapped = jnp.where(reverse[:, None], num_classes - 1 - base, base)    # (B, C)
    return mapped.T.astype(jnp.int32)                                     # (C, B)


def ref_forward(x, thresholds, mapping):
    """Pure-JAX reference of the same semantics (for verification)."""
    d = (x[None, :, :] > thresholds[:, None, None]).sum(axis=0).astype(jnp.int32)
    B = x.shape[1]
    return mapping[d, jnp.arange(B)[None, :]]


if __name__ == "__main__":
    key = jax.random.PRNGKey(0)
    k_nc, k_cls, k_x, k_map = jax.random.split(key, 4)

    # __init__: num_classes is sampled stochastically in the module (class_sampler_f);
    # TODO(synk): fixed deterministically here as a synthetic parameter choice.
    num_classes = 5
    classes = jax.random.normal(k_cls, (num_classes - 1,), dtype=jnp.float32)  # nn.Parameter

    T, B = 256, 8                     # seq_len x batch, matching d[:, cols] indexing
    x = jax.random.normal(k_x, (T, B), dtype=jnp.float32)
    mapping = build_column_mapping(k_map, num_classes, B, ordered_p=0.5)

    ref = ref_forward(x, classes, mapping)

    # Small explicit tile -> multi-step "parallel" grid (exercises pipelining / megacore path).
    out_small = multiclass_value_forward(x, classes, mapping, tb=8)
    out_small = jax.block_until_ready(out_small)
    assert out_small.shape == (T, B) and out_small.dtype == jnp.int32
    assert bool(jnp.all(out_small == ref)), "Pallas kernel (tb=8) mismatch vs JAX reference"

    # Default large tile -> single lane-dense block (exercises the padding/clamp path).
    out_big = multiclass_value_forward(x, classes, mapping)
    out_big = jax.block_until_ready(out_big)
    assert bool(jnp.all(out_big == ref)), "Pallas kernel (default tb) mismatch vs JAX reference"

    print("KERNEL_OK")
</pallas_src>

<mosaic_0001>
module attributes {stable_mosaic.version = 11 : i64} {
  func.func @kernel(%arg0: i32, %arg1: memref<4x128xf32, #tpu.memory_space<vmem>>, %arg2: memref<4x128xi32, #tpu.memory_space<vmem>>, %arg3: memref<1x128xi32, #tpu.memory_space<vmem>>, %arg4: memref<8x128xf32, #tpu.memory_space<vmem>>, %arg5: memref<8x128xi32, #tpu.memory_space<vmem>>) attributes {dimension_semantics = [#tpu.dimension_semantics<parallel>], iteration_bounds = array<i64: 2>, scalar_prefetch = 0 : i64, scratch_operands = 0 : i64, tpu.core_type = #tpu.core_type<tc>, window_params = [{pipeline_mode = #tpu.pipeline_mode<synchronous>, transform_indices = @transform_0, window_bounds = array<i64: 4, 128>}, {pipeline_mode = #tpu.pipeline_mode<synchronous>, transform_indices = @transform_1, window_bounds = array<i64: 4, 128>}, {pipeline_mode = #tpu.pipeline_mode<synchronous>, transform_indices = @transform_2, window_bounds = array<i64: 1, 128>}, {transform_indices = @transform_3, window_bounds = array<i64: 8, 128>}, {transform_indices = @transform_4, window_bounds = array<i64: 8, 128>}]} {
    %c0 = arith.constant 0 : index
    %c0_0 = arith.constant 0 : index
    %0 = vector.load %arg4[%c0, %c0_0] : memref<8x128xf32, #tpu.memory_space<vmem>>, vector<8x128xf32>
    %c0_1 = arith.constant 0 : index
    %c0_2 = arith.constant 0 : index
    %1 = vector.load %arg1[%c0_1, %c0_2] : memref<4x128xf32, #tpu.memory_space<vmem>>, vector<4x128xf32>
    %c0_3 = arith.constant 0 : index
    %c0_4 = arith.constant 0 : index
    %2 = vector.load %arg2[%c0_3, %c0_4] : memref<4x128xi32, #tpu.memory_space<vmem>>, vector<4x128xi32>
    %c0_5 = arith.constant 0 : index
    %c0_6 = arith.constant 0 : index
    %3 = vector.load %arg3[%c0_5, %c0_6] : memref<1x128xi32, #tpu.memory_space<vmem>>, vector<1x128xi32>
    %4 = vector.shape_cast %3 : vector<1x128xi32> to vector<1x128xi32>
    %5 = vector.broadcast %4 : vector<1x128xi32> to vector<8x128xi32>
    %6 = vector.extract_strided_slice %1 {offsets = [0, 0], sizes = [1, 128], strides = [1, 1]} : vector<4x128xf32> to vector<1x128xf32>
    %7 = vector.broadcast %6 : vector<1x128xf32> to vector<8x128xf32>
    %8 = arith.cmpf ogt, %0, %7 : vector<8x128xf32>
    %9 = vector.extract_strided_slice %2 {offsets = [0, 0], sizes = [1, 128], strides = [1, 1]} : vector<4x128xi32> to vector<1x128xi32>
    %c0_i32 = arith.constant 0 : i32
    %10 = vector.shape_cast %9 : vector<1x128xi32> to vector<1x128xi32>
    %11 = vector.broadcast %10 : vector<1x128xi32> to vector<8x128xi32>
    %12 = vector.broadcast %c0_i32 : i32 to vector<8x128xi32>
    %13 = arith.select %8, %11, %12 : vector<8x128xi1>, vector<8x128xi32>
    %14 = arith.addi %5, %13 : vector<8x128xi32>
    %15 = vector.extract_strided_slice %1 {offsets = [1, 0], sizes = [1, 128], strides = [1, 1]} : vector<4x128xf32> to vector<1x128xf32>
    %16 = vector.broadcast %15 : vector<1x128xf32> to vector<8x128xf32>
    %17 = arith.cmpf ogt, %0, %16 : vector<8x128xf32>
    %18 = vector.extract_strided_slice %2 {offsets = [1, 0], sizes = [1, 128], strides = [1, 1]} : vector<4x128xi32> to vector<1x128xi32>
    %c0_i32_7 = arith.constant 0 : i32
    %19 = vector.shape_cast %18 : vector<1x128xi32> to vector<1x128xi32>
    %20 = vector.broadcast %19 : vector<1x128xi32> to vector<8x128xi32>
    %21 = vector.broadcast %c0_i32_7 : i32 to vector<8x128xi32>
    %22 = arith.select %17, %20, %21 : vector<8x128xi1>, vector<8x128xi32>
    %23 = arith.addi %14, %22 : vector<8x128xi32>
    %24 = vector.extract_strided_slice %1 {offsets = [2, 0], sizes = [1, 128], strides = [1, 1]} : vector<4x128xf32> to vector<1x128xf32>
    %25 = vector.broadcast %24 : vector<1x128xf32> to vector<8x128xf32>
    %26 = arith.cmpf ogt, %0, %25 : vector<8x128xf32>
    %27 = vector.extract_strided_slice %2 {offsets = [2, 0], sizes = [1, 128], strides = [1, 1]} : vector<4x128xi32> to vector<1x128xi32>
    %c0_i32_8 = arith.constant 0 : i32
    %28 = vector.shape_cast %27 : vector<1x128xi32> to vector<1x128xi32>
    %29 = vector.broadcast %28 : vector<1x128xi32> to vector<8x128xi32>
    %30 = vector.broadcast %c0_i32_8 : i32 to vector<8x128xi32>
    %31 = arith.select %26, %29, %30 : vector<8x128xi1>, vector<8x128xi32>
    %32 = arith.addi %23, %31 : vector<8x128xi32>
    %33 = vector.extract_strided_slice %1 {offsets = [3, 0], sizes = [1, 128], strides = [1, 1]} : vector<4x128xf32> to vector<1x128xf32>
    %34 = vector.broadcast %33 : vector<1x128xf32> to vector<8x128xf32>
    %35 = arith.cmpf ogt, %0, %34 : vector<8x128xf32>
    %36 = vector.extract_strided_slice %2 {offsets = [3, 0], sizes = [1, 128], strides = [1, 1]} : vector<4x128xi32> to vector<1x128xi32>
    %c0_i32_9 = arith.constant 0 : i32
    %37 = vector.shape_cast %36 : vector<1x128xi32> to vector<1x128xi32>
    %38 = vector.broadcast %37 : vector<1x128xi32> to vector<8x128xi32>
    %39 = vector.broadcast %c0_i32_9 : i32 to vector<8x128xi32>
    %40 = arith.select %35, %38, %39 : vector<8x128xi1>, vector<8x128xi32>
    %41 = arith.addi %32, %40 : vector<8x128xi32>
    %c0_10 = arith.constant 0 : index
    %c0_11 = arith.constant 0 : index
    %42 = vector.load %arg5[%c0_10, %c0_11] : memref<8x128xi32, #tpu.memory_space<vmem>>, vector<8x128xi32>
    tpu.vector_store %arg5[%c0_10, %c0_11], %41 {strides = array<i32>} : memref<8x128xi32, #tpu.memory_space<vmem>>, vector<8x128xi32>,
    return
  }
  func.func @transform_0(%arg0: i32) -> (i32, i32) {
    %c0_i32 = arith.constant 0 : i32
    %c0_i32_0 = arith.constant 0 : i32
    %c0_i32_1 = arith.constant 0 : i32
    return %c0_i32, %c0_i32_0 : i32, i32
  }
  func.func @transform_1(%arg0: i32) -> (i32, i32) {
    %c0_i32 = arith.constant 0 : i32
    %c0_i32_0 = arith.constant 0 : i32
    %c0_i32_1 = arith.constant 0 : i32
    return %c0_i32, %c0_i32_0 : i32, i32
  }
  func.func @transform_2(%arg0: i32) -> (i32, i32) {
    %c0_i32 = arith.constant 0 : i32
    %c0_i32_0 = arith.constant 0 : i32
    %c0_i32_1 = arith.constant 0 : i32
    return %c0_i32, %c0_i32_0 : i32, i32
  }
  func.func @transform_3(%arg0: i32) -> (i32, i32) {
    %c0_i32 = arith.constant 0 : i32
    %c0_i32_0 = arith.constant 0 : i32
    return %arg0, %c0_i32 : i32, i32
  }
  func.func @transform_4(%arg0: i32) -> (i32, i32) {
    %c0_i32 = arith.constant 0 : i32
    %c0_i32_0 = arith.constant 0 : i32
    return %arg0, %c0_i32 : i32, i32
  }
}

</mosaic_0001>

<bundles_post_ra>
// kernel: tpu_custom_call.1
= control target key start
LH: loop header
LB: loop body
LE: loop exit
PB: predicated region body
PF: predicated region fallthrough
CT: control target
= control target key end

     0   :  { %9 = vsyncpa [#allocation3], 0  ;;  %s836_s0 = inlined_call_operand.hbm [shape: f32[4,128], index: 0, kind: input, shape index: {}]   ;;  %s837_s1 = inlined_call_operand.hbm [shape: s32[4,128], index: 1, kind: input, shape index: {}]   ;;  %s838_s2 = inlined_call_operand.vmem [shape: s32[1,128], index: 2, kind: input, shape index: {}]   ;;  %s839_s3 = inlined_call_operand.hbm [shape: f32[16,128], index: 3, kind: input, shape index: {}]   ;;  %s840_s4 = inlined_call_operand.hbm [shape: s32[16,128], index: 4, kind: output, shape index: {}]  }
   0x1   :  { %10 = vsyncpa [#allocation6], 0 }
   0x2   :  { %11 = vsyncpa [#allocation4], 0 }
   0x3   :  { %13 = vsyncpa [#allocation4 + $0x1], 0  ;;  %s659_s15 = smov 0   ;;  %s661_s16 = smov 0  }
   0x4   :  { %s663_s17 = smov 0   ;;  %s665_s18 = smov 0  }
   0x5 LB: > { %s680_s19 = sadd.s32 4294967295, %s628_s18   ;;  %s392_s20 = sadd.s32 4294967294, %s628_s18   ;;  %s628_s18 = sphi %s665_s18, %s864_s18   ;;  %s624_s17 = sphi %s663_s17, %s863_s17   ;;  %s620_s16 = sphi %s661_s16, %s862_s16   ;;  %s616_s15 = sphi %s659_s15, %s861_s15  }
   0x6   : > { %p102_p0 = scmp.ne.s32.totalorder %s620_s16, %s616_s15  ;;  %p841_p1 = scmp.eq.s32.totalorder %s680_s19, 0 }
   0x7   : > { %p132_p3 = scmp.eq.s32.totalorder %s392_s20, 1  ;;  %p393_p5 = scmp.ge.s32.totalorder %s628_s18, 1 }
   0x8   : > { %p689_p4 = por %p841_p1, %p102_p0  ;;  %p139_p7 = scmp.lt.s32.totalorder %s628_s18, 3 }
   0x9   : > { %p694_p6 = por %p132_p3, %p102_p0  ;;  %s630_s24 = smov [#allocation2]  }
   0xa   : > { %s845_s21 = scalar_select %p689_p4, 1, 0 }
   0xb   : > { %s846_s22 = scalar_select %p694_p6, 1, 0 }
   0xc   : > { %p699_p8 = pnand %p393_p5, %p139_p7  ;;  %s152_s25 = sshll.u32 %s630_s24, 4  ;;  %s153_s25 = int_to_ptr.vmem [resolvable:$true] %s152_s25 }
   0xd   : > { %s631_s26 = smov [#allocation5]   ;;  %s713_s29 = sadd.s32 1, %s628_s18  }
   0xe   : > { %s847_s23 = scalar_select %p699_p8, 1, 0 }
   0xf   : > { %p421_p10 = pneg %p699_p8  ;;  %s163_s27 = sshll.u32 %s631_s26, 4  ;;  %s164_s27 = int_to_ptr.vmem [resolvable:$true] %s163_s27 }
  0x10   : > { %s86_s30 = ssub.s32 %s628_s18, %s713_s29  ;;  %s487_s5 = scalar_lea.vmem %s153_s25, 64 }
  0x11   : > { %p708_p11 = pnand %p421_p10, %p841_p1  ;;  %p488_p13 = scmp.ne.s32.totalorder %s153_s25, %s487_s5 }
  0x12   : > { %p495_p5 = scmp.lt.s32.totalorder %s153_s25, %s153_s25  ;;  %p496_p7 = scmp.lt.s32.totalorder %s487_s5, %s487_s5 }
  0x13   : > { %p478_p12 = pneg %p708_p11 }
  0x14   : > { %p497_p10 = por %p496_p7, %p495_p5 }
  0x15   : > { %p490_p0 = pnand %p488_p13, %p478_p12 }
  0x17   : > { %p491_p3 = pneg %p490_p0 }
  0x19   : > { %p498_p9 = pnand %p497_p10, %p491_p3 }
  0x1b   : > { %501 = shalt.err (!%p498_p9)
}
  0x1c   : > { %424 = dma.hbm_to_vmem [thread:$0]  (!%p708_p11), %s836_s0, 64, %s153_s25, [#allocation3]  }
  0x1d   : > { %s513_s8 = scalar_lea.vmem %s164_s27, 64  ;;  %p521_p13 = scmp.lt.s32.totalorder %s164_s27, %s164_s27 }
  0x1e   : > { %p514_p1 = scmp.ne.s32.totalorder %s164_s27, %s513_s8  ;;  %p522_p0 = scmp.lt.s32.totalorder %s513_s8, %s513_s8 }
  0x20   : > { %p516_p2 = pnand %p514_p1, %p478_p12  ;;  %p523_p4 = por %p522_p0, %p521_p13 }
  0x22   : > { %p517_p6 = pneg %p516_p2 }
  0x24   : > { %p524_p8 = pnand %p523_p4, %p517_p6 }
  0x26   : > { %527 = shalt.err (!%p524_p8)
}
  0x27   : > { %427 = dma.hbm_to_vmem [thread:$0]  (!%p708_p11), %s837_s1, 64, %s164_s27, [#allocation6]  }
  0x28   : > { %p87_p1 = scmp.eq.s32.totalorder %s86_s30, 0  ;;  %s89_s11 = sadd.s32 1, %s624_s17 }
  0x29   : > { %p96_p2 = scmp.ne.s32.totalorder %s624_s17, %s620_s16  ;;  %p97_p4 = scmp.eq.s32.totalorder %s628_s18, 0 }
  0x2a   : > { %s740_s12 = scalar_select %p87_p1, %s624_s17, %s89_s11  }
  0x2b   : > { %p98_p6 = por %p97_p4, %p96_p2  ;;  %p849_p8 = scmp.eq.s32.totalorder %s680_s19, 1 }
  0x2c   : > { %p438_p12 = scmp.lt.s32.totalorder %s628_s18, 2  ;;  %s177_s14 = sand.u32 1, %s628_s18  }
  0x2d   : > { %p744_p9 = por %p849_p8, %p96_p2  ;;  %s179_s20 = sand.u32 1, %s624_s17  }
  0x2e   : > { %s397_s24 = sshll.u32 %s179_s20, 3  ;;  %s398_s25 = sshll.u32 %s628_s18, 7 }
  0x2f   : > { %s850_s13 = scalar_select %p744_p9, 1, 0 }
  0x30   : > { %s755_s27 = scalar_lea.hbm %s839_s3, %s398_s25  ;;  %s181_s30 = scalar_lea.vmem [#allocation7], %s397_s24 }
  0x31   : > { %s188_s5 = sshll.u32 %s181_s30, 4  ;;  %p757_p11 = pnand %p438_p12, %p98_p6  ;;  %s189_s5 = int_to_ptr.vmem [resolvable:$true] %s188_s5 }
  0x32   : > { %s178_s7 = scalar_lea.sflag [#allocation3], %s177_s14  ;;  %s528_s8 = scalar_lea.hbm %s755_s27, 128 }
  0x33   : > { %p529_p3 = scmp.ne.s32.totalorder %s755_s27, %s528_s8  ;;  %p530_p5 = pneg %p757_p11 }
  0x34   : > { %s533_s11 = scalar_lea.hbm %s839_s3, 256  ;;  %p534_p13 = scmp.lt.s32.totalorder %s755_s27, %s839_s3 }
  0x35   : > { %p531_p7 = pnand %p530_p5, %p529_p3  ;;  %p535_p0 = scmp.lt.s32.totalorder %s533_s11, %s528_s8 }
  0x37   : > { %p532_p10 = pneg %p531_p7  ;;  %p536_p1 = por %p535_p0, %p534_p13 }
  0x39   : > { %p537_p2 = pnand %p536_p1, %p532_p10 }
  0x3b   : > { %540 = shalt.err (!%p537_p2)
}
  0x3c   : > { %s541_s25 = scalar_lea.vmem %s189_s5, 128  ;;  %s632_s14 = smov [#allocation7]  }
  0x3d   : > { %p542_p4 = scmp.ne.s32.totalorder %s189_s5, %s541_s25  ;;  %s546_s26 = sshll.u32 %s632_s14, 4  ;;  %s547_s26 = int_to_ptr.vmem [resolvable:$false] %s546_s26 }
  0x3e   : > { %s548_s28 = scalar_lea.vmem %s547_s26, 256  ;;  %p549_p12 = scmp.lt.s32.totalorder %s189_s5, %s547_s26 }
  0x3f   : > { %p544_p6 = pnand %p542_p4, %p530_p5  ;;  %p550_p3 = scmp.lt.s32.totalorder %s548_s28, %s541_s25 }
  0x41   : > { %p545_p8 = pneg %p544_p6  ;;  %p551_p7 = por %p550_p3, %p549_p12 }
  0x43   : > { %p552_p9 = pnand %p551_p7, %p545_p8 }
  0x45   : > { %555 = shalt.err (!%p552_p9)
}
  0x46   : > { %431 = dma.hbm_to_vmem [thread:$0]  (!%p757_p11), %s755_s27, 128, %s189_s5, %s178_s7  }
  0x47   : > { %p852_p10 = scmp.ne.s32.totalorder %s847_s23, 0 }
  0x48   : > { %p853_p13 = scmp.eq.s32.totalorder (!%p852_p10), %s680_s19, 0 }
  0x49   : > { %197 = sbr.rel (%p852_p10) target bundleno = 119 (0x77), region = 36 }
  0x4e   : > { %599 = dma.done.wait (%p853_p13), [#allocation3], 64   ;;  %p854_p5 = pmov %p853_p13 }
  0x50   : > { %601 = vsyncadd (%p854_p5), [#allocation3], 4294967232  ;;  %p855_p0 = pmov %p854_p5 }
  0x52   : > { %603 = dma.done.wait (%p855_p0), [#allocation6], 64   ;;  %p856_p1 = pmov %p855_p0 }
  0x53   : > { %s207_s27 = sand.u32 1, %s680_s19   ;;  %s209_s30 = sand.u32 1, %s620_s16  }
  0x54   : > { %605 = vsyncadd (%p856_p1), [#allocation6], 4294967232  ;;  %s789_s23 = sshll.u32 %s209_s30, 3  ;;  %s208_s5 = scalar_lea.sflag [#allocation3], %s207_s27 }
  0x55   : > { %s211_s6 = scalar_lea.vmem [#allocation7], %s789_s23  ;;  %p857_p9 = scmp.ne.s32.totalorder %s845_s21, 0 }
  0x57   : > { %607 = dma.done.wait (%p857_p9), %s208_s5, 128  }
  0x58   : > { %609 = vsyncadd (%p857_p9), %s208_s5, 4294967168  ;;  %v244_v0 = vlaneseq  ;;  %v236_v6 = vld [vmem:[%s211_s6] sm:$0xff]  ;;  %v237_v7 = vld [vmem:[#allocation2] sm:$0xf]  ;;  %s235_s21 = scalar_lea.vmem [#allocation8], %s789_s23  ;;  %s406_s10 = sshll.u32 %s680_s19, 7 }
  0x59   : > { %v238_v8 = vld [vmem:[#allocation5] sm:$0xf]  ;;  %v404_v13 = vld [vmem:[%s838_s2] ss:$0 sm:$0xff]  ;;  %s303_s9 = sshll.u32 %s235_s21, 4  ;;  %s301_s24 = scalar_lea.hbm %s840_s4, %s406_s10  ;;  %s304_s9 = int_to_ptr.vmem [resolvable:$true] %s303_s9 }
  0x5a   : > { %v245_v1 = vshrl.u32 %v244_v0, 7  ;;  %s290_s25 = scalar_lea.sflag [#allocation4], %s209_s30  ;;  %s556_s14 = scalar_lea.vmem %s304_s9, 128 }
  0x5b   : > { %p557_p11 = scmp.ne.s32.totalorder %s304_s9, %s556_s14  ;;  %p858_p2 = scmp.ne.s32.totalorder %s850_s13, 0 }
  0x5c   : > { %v246_v2 = vsub.s32 0, %v245_v1  ;;  %v257_v3 = vsub.s32 1, %v245_v1  ;;  %v268_v4 = vsub.s32 2, %v245_v1  ;;  %v279_v5 = vsub.s32 3, %v245_v1  ;;  %s633_s26 = smov [#allocation8]  }
  0x5d   : > { %p558_p4 = pnand %p557_p11, %p858_p2  ;;  %s560_s28 = sshll.u32 %s633_s26, 4  ;;  %s561_s28 = int_to_ptr.vmem [resolvable:$false] %s560_s28 }
  0x5e   : > { %v247_v9 = vrot.slane %v237_v7, %v246_v2  ;;  %v252_v10 = vrot.slane %v238_v8, %v246_v2  ;;  %v258_v11 = vrot.slane %v237_v7, %v257_v3  ;;  %v263_v12 = vrot.slane %v238_v8, %v257_v3  ;;  %s562_s27 = scalar_lea.vmem %s561_s28, 256  ;;  %p563_p8 = scmp.lt.s32.totalorder %s304_s9, %s561_s28 }
  0x5f   : > { %v269_v14 = vrot.slane %v237_v7, %v268_v4  ;;  %v274_v15 = vrot.slane %v238_v8, %v268_v4  ;;  %v280_v16 = vrot.slane %v237_v7, %v279_v5  ;;  %v285_v19 = vrot.slane %v238_v8, %v279_v5  ;;  %p559_p6 = pneg %p558_p4  ;;  %p564_p12 = scmp.lt.s32.totalorder %s562_s27, %s556_s14 }
  0x60   : > { %vm248_vm0 = vcmp.gt.f32.partialorder %v236_v6, %v247_v9  ;;  %vm259_vm1 = vcmp.gt.f32.partialorder %v236_v6, %v258_v11 }
  0x61   : > { %v253_v17 = vsel %vm248_vm0, %v252_v10, 0  ;;  %v264_v18 = vsel %vm259_vm1, %v263_v12, 0  ;;  %vm270_vm2 = vcmp.gt.f32.partialorder %v236_v6, %v269_v14  ;;  %vm281_vm3 = vcmp.gt.f32.partialorder %v236_v6, %v280_v16  ;;  %p565_p3 = por %p564_p12, %p563_p8 }
  0x62   : > { %v254_v20 = vadd.s32 %v404_v13, %v253_v17  ;;  %v275_v21 = vsel %vm270_vm2, %v274_v15, 0  ;;  %v286_v23 = vsel %vm281_vm3, %v285_v19, 0 }
  0x63   : > { %p566_p7 = pnand %p565_p3, %p559_p6 }
  0x64   : > { %v265_v22 = vadd.s32 %v264_v18, %v254_v20 }
  0x66   : > { %v276_v24 = vadd.s32 %v275_v21, %v265_v22 }
  0x68   : > { %v287_v25 = vadd.s32 %v286_v23, %v276_v24 }
  0x6a   : > { %288 = vst [vmem:[%s235_s21] sm:$0xff] %v287_v25 }
  0x6b   : > { %569 = shalt.err (!%p566_p7)
}
  0x6c   : > { %s570_s19 = scalar_lea.hbm %s301_s24, 128  ;;  %s574_s5 = scalar_lea.hbm %s840_s4, 256 }
  0x6d   : > { %p571_p10 = scmp.ne.s32.totalorder %s301_s24, %s570_s19  ;;  %p575_p0 = scmp.lt.s32.totalorder %s301_s24, %s840_s4 }
  0x6e   : > { %p576_p1 = scmp.lt.s32.totalorder %s574_s5, %s570_s19 }
  0x6f   : > { %p572_p13 = pnand %p571_p10, %p858_p2 }
  0x70   : > { %p577_p9 = por %p576_p1, %p575_p0 }
  0x71   : > { %p573_p5 = pneg %p572_p13 }
  0x73   : > { %p578_p11 = pnand %p577_p9, %p573_p5 }
  0x75   : > { %581 = shalt.err (!%p578_p11)
}
  0x76   : > { %419 = dma.vmem_to_hbm [thread:$0]  (%p858_p2), %s304_s9, 128, %s301_s24, %s290_s25  }
  0x77 PF: > { %s315_s8 = sand.u32 1, %s616_s15   ;;  %p859_p4 = scmp.ne.s32.totalorder %s846_s22, 0 }
  0x78   : > { %p860_p6 = scmp.ge.s32.totalorder %s628_s18, 2  ;;  %s316_s21 = scalar_lea.sflag [#allocation4], %s315_s8 }
  0x7a   : > { %p433_p8 = pnand %p860_p6, %p859_p4 }
  0x7c   : > { %p434_p12 = pneg %p433_p8 }
  0x7e   : > { %611 = dma.done.wait (%p434_p12), %s316_s21, 128  }
  0x7f   : > { %613 = vsyncadd (%p434_p12), %s316_s21, 4294967168  ;;  %p16_p3 = scmp.ge.s32.totalorder %s713_s29, 4   ;;  %s861_s15 = smov %s620_s16 }
  0x80   : > { %s862_s16 = smov %s624_s17  ;;  %s863_s17 = smov %s740_s12 }
  0x81   : > { %s864_s18 = smov %s713_s29  ;;  %18 = sbr.rel (!%p16_p3) target bundleno = 5 (0x5), region = 88 }
  0x86   :  { %321 = vsyncpa [#allocation3], 1 }
  0x87   :  { %323 = vsyncpa [#allocation3 + $0x1], 1 }
  0x88   :  { %324 = vsyncpa [#allocation6], 1 }
  0x89   :  { %325 = vsyncpa [#allocation4], 1 }
  0x8a   :  { %327 = vsyncpa [#allocation4 + $0x1], 1 }

</bundles_post_ra>
